<compile_context>
chip_gen: v6e
topology: v6e:2x2x1
jax: 0.10.0
libtpu: 0.0.40
codegen_flags: <defaults>
</compile_context>

<pallas_src>
import jax
import jax.numpy as jnp
import numpy as np
from jax.experimental import pallas as pl
from jax.experimental.pallas import tpu as pltpu

HIDDEN = 128


def _round_up(n, m):
    return ((n + m - 1) // m) * m


def ffn_kernel(x_ref, w1_ref, b1_ref, w2_ref, b2_ref, w3_ref, b3_ref, o_ref):
    x = x_ref[...]                                                    # (tb, in_dim) f32

    # Linear 1 + ReLU  (f32 operands, f32 accumulation)
    h = jnp.dot(x, w1_ref[...], preferred_element_type=jnp.float32) + b1_ref[...]
    h = jnp.maximum(h, 0.0)

    # Linear 2 + Dropout(eval: identity) + ReLU
    h = jnp.dot(h, w2_ref[...], preferred_element_type=jnp.float32) + b2_ref[...]
    h = jnp.maximum(h, 0.0)

    # Linear 3 + Softmax (exact normalization)
    logits = jnp.dot(h, w3_ref[...], preferred_element_type=jnp.float32) + b3_ref[...]
    m = jnp.max(logits, axis=-1, keepdims=True)
    e = jnp.exp(logits - m)
    o_ref[...] = e / jnp.sum(e, axis=-1, keepdims=True)


def _choose_tile(b8, tile_b):
    """Pick a batch tile that minimizes padding waste (b8 is already a multiple of 8)."""
    if b8 <= tile_b:
        return b8                       # single tile, zero padding beyond the 8-row alignment
    best_tb, best_pad = tile_b, _round_up(b8, tile_b)
    t = tile_b // 2
    while t >= 128:
        pad = _round_up(b8, t)
        if pad < best_pad:
            best_tb, best_pad = t, pad
        t //= 2
    return best_tb


def _dim_semantics(grid0):
    kind = jax.devices()[0].device_kind.lower()
    if ("v7" in kind or "7x" in kind) and grid0 >= 2:
        return (pltpu.CORE_PARALLEL,)   # split the batch grid across the 2 TCs on v7x
    return ("parallel",)


def ffn_forward(x, params, *, tile_b=2048):
    """x: (B, in_dim) float32. params: w1,b1,w2,b2,w3,b3 with weights stored as (in, out)."""
    B, in_dim = x.shape
    hid = params["w1"].shape[1]
    out_dim = params["w3"].shape[1]

    # Pad batch only to a multiple of 8 (sublane), then tile adaptively.
    b8 = _round_up(max(B, 1), 8)
    tb = _choose_tile(b8, tile_b)
    b_pad = _round_up(b8, tb)
    x_p = jnp.pad(x, ((0, b_pad - B), (0, 0))) if b_pad != B else x

    w1 = params["w1"]
    b1 = params["b1"]
    w2 = params["w2"]
    b2 = params["b2"]
    w3 = params["w3"]
    b3 = params["b3"]

    def const_spec(a):
        # Constant index_map -> block stays VMEM-resident across all grid steps.
        return pl.BlockSpec(a.shape, lambda i, nd=a.ndim: (0,) * nd)

    grid = (b_pad // tb,)
    in_specs = [
        pl.BlockSpec((tb, in_dim), lambda i: (i, 0)),
        const_spec(w1), const_spec(b1),
        const_spec(w2), const_spec(b2),
        const_spec(w3), const_spec(b3),
    ]
    # Narrow (un-padded) output block: last dim == full array dim, so it is a legal block shape.
    out_specs = pl.BlockSpec((tb, out_dim), lambda i: (i, 0))

    flops = 2 * b_pad * (in_dim * hid + hid * hid + hid * out_dim)
    transcendentals = b_pad * out_dim                     # exp per logit
    bytes_accessed = (x_p.size + b_pad * out_dim
                      + w1.size + w2.size + w3.size
                      + b1.size + b2.size + b3.size) * 4

    out = pl.pallas_call(
        ffn_kernel,
        out_shape=jax.ShapeDtypeStruct((b_pad, out_dim), jnp.float32),
        grid=grid,
        in_specs=in_specs,
        out_specs=out_specs,
        compiler_params=pltpu.CompilerParams(dimension_semantics=_dim_semantics(grid[0])),
        cost_estimate=pl.CostEstimate(flops=flops, transcendentals=transcendentals,
                                      bytes_accessed=bytes_accessed),
    )(x_p, w1, b1, w2, b2, w3, b3)

    return out if b_pad == B else out[:B]


def init_linear(key, fan_in, fan_out):
    """PyTorch nn.Linear default init: U(-1/sqrt(fan_in), 1/sqrt(fan_in))."""
    kw, kb = jax.random.split(key)
    bound = 1.0 / np.sqrt(fan_in)
    # stored as (in, out) so the kernel does x @ W
    w = jax.random.uniform(kw, (fan_in, fan_out), jnp.float32, -bound, bound)
    b = jax.random.uniform(kb, (1, fan_out), jnp.float32, -bound, bound)
    return w, b


def make_params(key, in_dim, out_dim):
    k1, k2, k3 = jax.random.split(key, 3)
    w1, b1 = init_linear(k1, in_dim, HIDDEN)
    w2, b2 = init_linear(k2, HIDDEN, HIDDEN)
    w3, b3 = init_linear(k3, HIDDEN, out_dim)
    return dict(w1=w1, b1=b1, w2=w2, b2=b2, w3=w3, b3=b3)


def ffn_reference(x, p):
    """Pure-JAX f32 reference (PyTorch eval semantics: dropout = identity)."""
    h = jnp.maximum(x @ p["w1"] + p["b1"], 0.0)
    h = jnp.maximum(h @ p["w2"] + p["b2"], 0.0)
    logits = h @ p["w3"] + p["b3"]
    return jax.nn.softmax(logits, axis=-1)


if __name__ == "__main__":
    in_dim, out_dim = 32, 16
    key = jax.random.PRNGKey(0)
    kx, kp, kx2 = jax.random.split(key, 3)
    params = make_params(kp, in_dim, out_dim)

    # Small-batch case (single 8-row tile).
    B = 8
    x = jax.random.normal(kx, (B, in_dim), jnp.float32)
    out = jax.block_until_ready(ffn_forward(x, params))
    ref = ffn_reference(x, params)
    assert out.shape == (B, out_dim)
    np.testing.assert_allclose(np.asarray(out), np.asarray(ref), rtol=0, atol=2e-2)
    np.testing.assert_allclose(np.asarray(out).sum(-1), np.ones(B), rtol=0, atol=1e-5)

    # Larger-batch case (exercises adaptive tiling; 600 -> one 600-row tile, no padding waste).
    B2 = 600
    x2 = jax.random.normal(kx2, (B2, in_dim), jnp.float32)
    out2 = jax.block_until_ready(ffn_forward(x2, params))
    ref2 = ffn_reference(x2, params)
    assert out2.shape == (B2, out_dim)
    np.testing.assert_allclose(np.asarray(out2), np.asarray(ref2), rtol=0, atol=2e-2)
    np.testing.assert_allclose(np.asarray(out2).sum(-1), np.ones(B2), rtol=0, atol=1e-5)

    print("KERNEL_OK")
</pallas_src>

<mosaic_0001>
module attributes {stable_mosaic.version = 11 : i64} {
  func.func @ffn_kernel(%arg0: i32, %arg1: memref<8x32xf32, #tpu.memory_space<vmem>>, %arg2: memref<32x128xf32, #tpu.memory_space<vmem>>, %arg3: memref<1x128xf32, #tpu.memory_space<vmem>>, %arg4: memref<128x128xf32, #tpu.memory_space<vmem>>, %arg5: memref<1x128xf32, #tpu.memory_space<vmem>>, %arg6: memref<128x16xf32, #tpu.memory_space<vmem>>, %arg7: memref<1x16xf32, #tpu.memory_space<vmem>>, %arg8: memref<8x16xf32, #tpu.memory_space<vmem>>) attributes {dimension_semantics = [#tpu.dimension_semantics<parallel>], iteration_bounds = array<i64: 1>, scalar_prefetch = 0 : i64, scratch_operands = 0 : i64, tpu.core_type = #tpu.core_type<tc>, window_params = [{transform_indices = @transform_0, window_bounds = array<i64: 8, 32>}, {pipeline_mode = #tpu.pipeline_mode<synchronous>, transform_indices = @transform_1, window_bounds = array<i64: 32, 128>}, {pipeline_mode = #tpu.pipeline_mode<synchronous>, transform_indices = @transform_2, window_bounds = array<i64: 1, 128>}, {pipeline_mode = #tpu.pipeline_mode<synchronous>, transform_indices = @transform_3, window_bounds = array<i64: 128, 128>}, {pipeline_mode = #tpu.pipeline_mode<synchronous>, transform_indices = @transform_4, window_bounds = array<i64: 1, 128>}, {pipeline_mode = #tpu.pipeline_mode<synchronous>, transform_indices = @transform_5, window_bounds = array<i64: 128, 16>}, {pipeline_mode = #tpu.pipeline_mode<synchronous>, transform_indices = @transform_6, window_bounds = array<i64: 1, 16>}, {transform_indices = @transform_7, window_bounds = array<i64: 8, 16>}]} {
    %c0 = arith.constant 0 : index
    %c0_0 = arith.constant 0 : index
    %0 = vector.load %arg1[%c0, %c0_0] : memref<8x32xf32, #tpu.memory_space<vmem>>, vector<8x32xf32>
    %c0_1 = arith.constant 0 : index
    %c0_2 = arith.constant 0 : index
    %1 = vector.load %arg2[%c0_1, %c0_2] : memref<32x128xf32, #tpu.memory_space<vmem>>, vector<32x128xf32>
    %cst = arith.constant dense<0.000000e+00> : vector<8x128xf32>
    %2 = tpu.matmul %0, %1, %cst {dimension_numbers = #tpu.dot_dimension_numbers<[1], [0], [0], [1], [0, 0, 1, 1], [], []>} : vector<8x32xf32>, vector<32x128xf32>, vector<8x128xf32> -> vector<8x128xf32>
    %c0_3 = arith.constant 0 : index
    %c0_4 = arith.constant 0 : index
    %3 = vector.load %arg3[%c0_3, %c0_4] : memref<1x128xf32, #tpu.memory_space<vmem>>, vector<1x128xf32>
    %4 = vector.broadcast %3 : vector<1x128xf32> to vector<8x128xf32>
    %5 = arith.addf %2, %4 : vector<8x128xf32>
    %cst_5 = arith.constant 0.000000e+00 : f32
    %6 = vector.broadcast %cst_5 : f32 to vector<8x128xf32>
    %7 = arith.maximumf %5, %6 : vector<8x128xf32>
    %c0_6 = arith.constant 0 : index
    %c0_7 = arith.constant 0 : index
    %8 = vector.load %arg4[%c0_6, %c0_7] : memref<128x128xf32, #tpu.memory_space<vmem>>, vector<128x128xf32>
    %cst_8 = arith.constant dense<0.000000e+00> : vector<8x128xf32>
    %9 = tpu.matmul %7, %8, %cst_8 {dimension_numbers = #tpu.dot_dimension_numbers<[1], [0], [0], [1], [0, 0, 1, 1], [], []>} : vector<8x128xf32>, vector<128x128xf32>, vector<8x128xf32> -> vector<8x128xf32>
    %c0_9 = arith.constant 0 : index
    %c0_10 = arith.constant 0 : index
    %10 = vector.load %arg5[%c0_9, %c0_10] : memref<1x128xf32, #tpu.memory_space<vmem>>, vector<1x128xf32>
    %11 = vector.broadcast %10 : vector<1x128xf32> to vector<8x128xf32>
    %12 = arith.addf %9, %11 : vector<8x128xf32>
    %cst_11 = arith.constant 0.000000e+00 : f32
    %13 = vector.broadcast %cst_11 : f32 to vector<8x128xf32>
    %14 = arith.maximumf %12, %13 : vector<8x128xf32>
    %c0_12 = arith.constant 0 : index
    %c0_13 = arith.constant 0 : index
    %15 = vector.load %arg6[%c0_12, %c0_13] : memref<128x16xf32, #tpu.memory_space<vmem>>, vector<128x16xf32>
    %cst_14 = arith.constant dense<0.000000e+00> : vector<8x16xf32>
    %16 = tpu.matmul %14, %15, %cst_14 {dimension_numbers = #tpu.dot_dimension_numbers<[1], [0], [0], [1], [0, 0, 1, 1], [], []>} : vector<8x128xf32>, vector<128x16xf32>, vector<8x16xf32> -> vector<8x16xf32>
    %c0_15 = arith.constant 0 : index
    %c0_16 = arith.constant 0 : index
    %17 = vector.load %arg7[%c0_15, %c0_16] : memref<1x16xf32, #tpu.memory_space<vmem>>, vector<1x16xf32>
    %18 = vector.broadcast %17 : vector<1x16xf32> to vector<8x16xf32>
    %19 = arith.addf %16, %18 : vector<8x16xf32>
    %cst_17 = arith.constant dense<0xFF800000> : vector<8xf32>
    %20 = vector.multi_reduction <maximumf>, %19, %cst_17 [1] : vector<8x16xf32> to vector<8xf32>
    %21 = vector.shape_cast %20 : vector<8xf32> to vector<8x1xf32>
    %22 = vector.broadcast %21 : vector<8x1xf32> to vector<8x16xf32>
    %23 = arith.subf %19, %22 : vector<8x16xf32>
    %24 = math.exp %23 : vector<8x16xf32>
    %cst_18 = arith.constant dense<0.000000e+00> : vector<8xf32>
    %25 = vector.multi_reduction <add>, %24, %cst_18 [1] : vector<8x16xf32> to vector<8xf32>
    %26 = vector.shape_cast %25 : vector<8xf32> to vector<8x1xf32>
    %27 = vector.broadcast %26 : vector<8x1xf32> to vector<8x16xf32>
    %28 = arith.divf %24, %27 : vector<8x16xf32>
    %c0_19 = arith.constant 0 : index
    %c0_20 = arith.constant 0 : index
    %29 = vector.load %arg8[%c0_19, %c0_20] : memref<8x16xf32, #tpu.memory_space<vmem>>, vector<8x16xf32>
    tpu.vector_store %arg8[%c0_19, %c0_20], %28 {strides = array<i32>} : memref<8x16xf32, #tpu.memory_space<vmem>>, vector<8x16xf32>,
    return
  }
  func.func @transform_0(%arg0: i32) -> (i32, i32) {
    %c0_i32 = arith.constant 0 : i32
    %c0_i32_0 = arith.constant 0 : i32
    return %arg0, %c0_i32 : i32, i32
  }
  func.func @transform_1(%arg0: i32) -> (i32, i32) {
    %c0_i32 = arith.constant 0 : i32
    %c0_i32_0 = arith.constant 0 : i32
    %c0_i32_1 = arith.constant 0 : i32
    return %c0_i32, %c0_i32_0 : i32, i32
  }
  func.func @transform_2(%arg0: i32) -> (i32, i32) {
    %c0_i32 = arith.constant 0 : i32
    %c0_i32_0 = arith.constant 0 : i32
    %c0_i32_1 = arith.constant 0 : i32
    return %c0_i32, %c0_i32_0 : i32, i32
  }
  func.func @transform_3(%arg0: i32) -> (i32, i32) {
    %c0_i32 = arith.constant 0 : i32
    %c0_i32_0 = arith.constant 0 : i32
    %c0_i32_1 = arith.constant 0 : i32
    return %c0_i32, %c0_i32_0 : i32, i32
  }
  func.func @transform_4(%arg0: i32) -> (i32, i32) {
    %c0_i32 = arith.constant 0 : i32
    %c0_i32_0 = arith.constant 0 : i32
    %c0_i32_1 = arith.constant 0 : i32
    return %c0_i32, %c0_i32_0 : i32, i32
  }
  func.func @transform_5(%arg0: i32) -> (i32, i32) {
    %c0_i32 = arith.constant 0 : i32
    %c0_i32_0 = arith.constant 0 : i32
    %c0_i32_1 = arith.constant 0 : i32
    return %c0_i32, %c0_i32_0 : i32, i32
  }
  func.func @transform_6(%arg0: i32) -> (i32, i32) {
    %c0_i32 = arith.constant 0 : i32
    %c0_i32_0 = arith.constant 0 : i32
    %c0_i32_1 = arith.constant 0 : i32
    return %c0_i32, %c0_i32_0 : i32, i32
  }
  func.func @transform_7(%arg0: i32) -> (i32, i32) {
    %c0_i32 = arith.constant 0 : i32
    %c0_i32_0 = arith.constant 0 : i32
    return %arg0, %c0_i32 : i32, i32
  }
}

</mosaic_0001>

<bundles_post_ra>
// kernel: tpu_custom_call.1
= control target key start
LH: loop header
LB: loop body
LE: loop exit
PB: predicated region body
PF: predicated region fallthrough
CT: control target
= control target key end

     0   :  { %12 = vsyncpa [#allocation3], 0  ;;  %s726_s0 = inlined_call_operand.vmem [shape: f32[8,32], index: 0, kind: input, shape index: {}]   ;;  %s727_s1 = inlined_call_operand.hbm [shape: f32[32,128], index: 1, kind: input, shape index: {}]   ;;  %s728_s2 = inlined_call_operand.vmem [shape: f32[1,128], index: 2, kind: input, shape index: {}]   ;;  %s729_s3 = inlined_call_operand.vmem [shape: f32[128,128], index: 3, kind: input, shape index: {}]   ;;  %s730_s4 = inlined_call_operand.vmem [shape: f32[1,128], index: 4, kind: input, shape index: {}]   ;;  %s731_s5 = inlined_call_operand.vmem [shape: f32[128,16], index: 5, kind: input, shape index: {}]   ;;  %s732_s6 = inlined_call_operand.vmem [shape: f32[1,16], index: 6, kind: input, shape index: {}]   ;;  %s733_s7 = inlined_call_operand.hbm [shape: f32[8,16], index: 7, kind: output, shape index: {}]  }
   0x1   :  { %13 = vsyncpa [#allocation4], 0  ;;  %s521_s24 = smov [#allocation2]  }
   0x2   :  { %s21_s25 = sshll.u32 %s521_s24, 4  ;;  %s22_s25 = int_to_ptr.vmem [resolvable:$true] %s21_s25 }
   0x3   :  { %s485_s26 = scalar_lea.vmem %s22_s25, 512  ;;  %p490_p1 = scmp.lt.s32.totalorder %s22_s25, %s22_s25 }
   0x4   :  { %p486_p0 = scmp.ne.s32.totalorder %s22_s25, %s485_s26  ;;  %p491_p2 = scmp.lt.s32.totalorder %s485_s26, %s485_s26 }
   0x6   :  { %p492_p3 = por %p491_p2, %p490_p1 }
   0x8   :  { %p493_p4 = pnand %p492_p3, %p486_p0 }
   0xa   :  { %496 = shalt.err (!%p493_p4)
}
   0xb   :  { %s522_s27 = smov 128   ;;  %s523_s28 = smov 8  }
   0xc   :  { %27 = dma.hbm_to_vmem [thread:$0]  %s727_s1, 512, %s22_s25, [#allocation3], %s522_s27, %s522_s27, %s523_s28  }
   0xd   :  { %517 = dma.done.wait [#allocation3], 512  }
   0xe   :  { %518 = vsyncadd [#allocation3], 4294966784  ;;  %v524_v0 = vmov 0.0   ;;  %vm525_vm0 = vmmov 0   ;;  %v45_v1 = vld [vmem:[#allocation2 + $0x18] sm:$0xff]  ;;  %v44_v2 = vld [vmem:[#allocation2 + $0x10] sm:$0xff] }
   0xf   :  { %386 = vmatprep.subr.mxu0 %v524_v0  ;;  %394 = vmatprep.mubr.msk.f32.mxu0 %vm525_vm0, %v524_v0  ;;  %v143_v3 = vld [vmem:[%s729_s3 + $0x78] sm:$0xff]  ;;  %v43_v4 = vld [vmem:[#allocation2 + $0x8] sm:$0xff]  ;;  %v142_v5 = vld [vmem:[%s729_s3 + $0x70] sm:$0xff]  ;;  %vm53_vm1 = vcmask 261120   ;;  %vm315_vm2 = vcmask 130048  }
  0x10   :  { %397 = vmatprep.subr.mxu1 %v524_v0  ;;  %429 = vmatprep.mubr.msk.f32.mxu1 %vm525_vm0, %v524_v0  ;;  %v141_v6 = vld [vmem:[%s729_s3 + $0x68] sm:$0xff]  ;;  %v42_v7 = vld [vmem:[#allocation2] sm:$0xff]  ;;  %v139_v10 = vld [vmem:[%s729_s3 + $0x58] sm:$0xff] }
  0x11   :  { %387 = vmatpush3.msra.mxu0 %v45_v1  ;;  %398 = vmatpush3.msra.mxu1 %v143_v3  ;;  %v41_v8 = vld [vmem:[%s726_s0] sm:$0xff]  ;;  %v138_v11 = vld [vmem:[%s729_s3 + $0x50] sm:$0xff]  ;;  %v137_v12 = vld [vmem:[%s729_s3 + $0x48] sm:$0xff] }
  0x12   :  { %388 = vmatprep.subr.mxu0 %v524_v0  ;;  %399 = vmatprep.subr.mxu1 %v524_v0  ;;  %v140_v9 = vld [vmem:[%s729_s3 + $0x60] sm:$0xff]  ;;  %v135_v14 = vld [vmem:[%s729_s3 + $0x38] sm:$0xff]  ;;  %v134_v15 = vld [vmem:[%s729_s3 + $0x30] sm:$0xff] }
  0x13   :  { %389 = vmatpush3.msra.mxu0 %v44_v2  ;;  %400 = vmatpush3.msra.mxu1 %v142_v5  ;;  %v136_v13 = vld [vmem:[%s729_s3 + $0x40] sm:$0xff]  ;;  %v133_v16 = vld [vmem:[%s729_s3 + $0x28] sm:$0xff]  ;;  %v131_v18 = vld [vmem:[%s729_s3 + $0x18] sm:$0xff] }
  0x14   :  { %390 = vmatprep.subr.mxu0 %v524_v0  ;;  %401 = vmatprep.subr.mxu1 %v524_v0  ;;  %v132_v17 = vld [vmem:[%s729_s3 + $0x20] sm:$0xff]  ;;  %v130_v19 = vld [vmem:[%s729_s3 + $0x10] sm:$0xff]  ;;  %v129_v20 = vld [vmem:[%s729_s3 + $0x8] sm:$0xff] }
  0x15   :  { %391 = vmatpush3.msra.mxu0 %v43_v4  ;;  %402 = vmatpush3.msra.mxu1 %v141_v6  ;;  %v128_v21 = vld [vmem:[%s729_s3] sm:$0xff]  ;;  %v237_v22 = vld [vmem:[%s731_s5 + $0x78] sm:$0xff]  ;;  %v236_v23 = vld [vmem:[%s731_s5 + $0x70] sm:$0xff] }
  0x16   :  { %392 = vmatprep.subr.mxu0 %v524_v0  ;;  %403 = vmatprep.subr.mxu1 %v524_v0  ;;  %v235_v24 = vld [vmem:[%s731_s5 + $0x68] sm:$0xff]  ;;  %v234_v25 = vld [vmem:[%s731_s5 + $0x60] sm:$0xff]  ;;  %v233_v26 = vld [vmem:[%s731_s5 + $0x58] sm:$0xff] }
  0x17   :  { %393 = vmatpush3.msra.mxu0 %v42_v7  ;;  %404 = vmatpush3.msra.mxu1 %v140_v9  ;;  %v232_v27 = vld [vmem:[%s731_s5 + $0x50] sm:$0xff]  ;;  %v231_v28 = vld [vmem:[%s731_s5 + $0x48] sm:$0xff]  ;;  %v230_v29 = vld [vmem:[%s731_s5 + $0x40] sm:$0xff] }
  0x18   :  { %395 = vmatmul.mubr.msk.f32.vlgmr.msra.gmra.mxu0 %vm53_vm1, %v41_v8  ;;  %405 = vmatprep.subr.mxu1 %v524_v0  ;;  %v229_v30 = vld [vmem:[%s731_s5 + $0x38] sm:$0xff]  ;;  %v228_v31 = vld [vmem:[%s731_s5 + $0x30] sm:$0xff]  ;;  %v227_v32 = vld [vmem:[%s731_s5 + $0x28] sm:$0xff] }
  0x19   :  { %432 = vmatprep.subr.mxu0 %v524_v0  ;;  %406 = vmatpush3.msra.mxu1 %v139_v10  ;;  %v226_v33 = vld [vmem:[%s731_s5 + $0x20] sm:$0xff]  ;;  %v225_v34 = vld [vmem:[%s731_s5 + $0x18] sm:$0xff]  ;;  %v224_v40 = vld [vmem:[%s731_s5 + $0x10] sm:$0xff] }
  0x1a   :  { %464 = vmatprep.mubr.msk.f32.mxu0 %vm525_vm0, %v524_v0  ;;  %407 = vmatprep.subr.mxu1 %v524_v0  ;;  %v343_v35 = vld [vmem:[%s728_s2] ss:$0 sm:$0xff]  ;;  %v223_v41 = vld [vmem:[%s731_s5 + $0x8] sm:$0xff] }
  0x1b   :  { %408 = vmatpush3.msra.mxu1 %v138_v11  ;;  %433 = vmatpush3.msra.mxu0 %v237_v22  ;;  %v222_v42 = vld [vmem:[%s731_s5] sm:$0xff] }
  0x1c   :  { %409 = vmatprep.subr.mxu1 %v524_v0  ;;  %434 = vmatprep.subr.mxu0 %v524_v0  ;;  %v345_v43 = vld [vmem:[%s730_s4] ss:$0 sm:$0xff]  ;;  %s526_s4 = smov [#allocation5]  }
  0x1d   :  { %410 = vmatpush3.msra.mxu1 %v137_v12  ;;  %435 = vmatpush3.msra.mxu0 %v236_v23  ;;  %v346_v48 = vld [vmem:[%s732_s6] ss:$0 sm:$0xff]  ;;  %s334_s5 = sshll.u32 %s526_s4, 4  ;;  %s335_s5 = int_to_ptr.vmem [resolvable:$true] %s334_s5 }
  0x1e   :  { %411 = vmatprep.subr.mxu1 %v524_v0  ;;  %436 = vmatprep.subr.mxu0 %v524_v0  ;;  %s497_s6 = scalar_lea.vmem %s335_s5, 128  ;;  %p502_p6 = scmp.lt.s32.totalorder %s335_s5, %s335_s5 }
  0x1f   :  { %412 = vmatpush3.msra.mxu1 %v136_v13  ;;  %437 = vmatpush3.msra.mxu0 %v235_v24  ;;  %p498_p5 = scmp.ne.s32.totalorder %s335_s5, %s497_s6  ;;  %p503_p7 = scmp.lt.s32.totalorder %s497_s6, %s497_s6 }
  0x20   :  { %413 = vmatprep.subr.mxu1 %v524_v0  ;;  %438 = vmatprep.subr.mxu0 %v524_v0 }
  0x21   :  { %414 = vmatpush3.msra.mxu1 %v135_v14  ;;  %439 = vmatpush3.msra.mxu0 %v234_v25  ;;  %p504_p8 = por %p503_p7, %p502_p6 }
  0x22   :  { %415 = vmatprep.subr.mxu1 %v524_v0  ;;  %440 = vmatprep.subr.mxu0 %v524_v0 }
  0x23   :  { %416 = vmatpush3.msra.mxu1 %v134_v15  ;;  %441 = vmatpush3.msra.mxu0 %v233_v26  ;;  %p505_p9 = pnand %p504_p8, %p498_p5 }
  0x24   :  { %417 = vmatprep.subr.mxu1 %v524_v0  ;;  %442 = vmatprep.subr.mxu0 %v524_v0 }
  0x25   :  { %418 = vmatpush3.msra.mxu1 %v133_v16  ;;  %443 = vmatpush3.msra.mxu0 %v232_v27 }
  0x26   :  { %419 = vmatprep.subr.mxu1 %v524_v0  ;;  %444 = vmatprep.subr.mxu0 %v524_v0 }
  0x27   :  { %420 = vmatpush3.msra.mxu1 %v132_v17  ;;  %445 = vmatpush3.msra.mxu0 %v231_v28 }
  0x28   :  { %421 = vmatprep.subr.mxu1 %v524_v0  ;;  %446 = vmatprep.subr.mxu0 %v524_v0 }
  0x29   :  { %422 = vmatpush3.msra.mxu1 %v131_v18  ;;  %447 = vmatpush3.msra.mxu0 %v230_v29 }
  0x2a   :  { %423 = vmatprep.subr.mxu1 %v524_v0  ;;  %448 = vmatprep.subr.mxu0 %v524_v0 }
  0x2b   :  { %424 = vmatpush3.msra.mxu1 %v130_v19  ;;  %449 = vmatpush3.msra.mxu0 %v229_v30 }
  0x2c   :  { %425 = vmatprep.subr.mxu1 %v524_v0  ;;  %450 = vmatprep.subr.mxu0 %v524_v0 }
  0x2d   :  { %426 = vmatpush3.msra.mxu1 %v129_v20  ;;  %451 = vmatpush3.msra.mxu0 %v228_v31 }
  0x2e   :  { %427 = vmatprep.subr.mxu1 %v524_v0  ;;  %452 = vmatprep.subr.mxu0 %v524_v0 }
  0x2f   :  { %428 = vmatpush3.msra.mxu1 %v128_v21  ;;  %453 = vmatpush3.msra.mxu0 %v227_v32 }
  0x30   :  { %454 = vmatprep.subr.mxu0 %v524_v0 }
  0x31   :  { %455 = vmatpush3.msra.mxu0 %v226_v33 }
  0x32   :  { %456 = vmatprep.subr.mxu0 %v524_v0 }
  0x33   :  { %457 = vmatpush3.msra.mxu0 %v225_v34 }
  0x34   :  { %458 = vmatprep.subr.mxu0 %v524_v0 }
  0x35   :  { %459 = vmatpush3.msra.mxu0 %v224_v40 }
  0x36   :  { %460 = vmatprep.subr.mxu0 %v524_v0 }
  0x37   :  { %461 = vmatpush3.msra.mxu0 %v223_v41 }
  0x38   :  { %462 = vmatprep.subr.mxu0 %v524_v0 }
  0x39   :  { %463 = vmatpush3.msra.mxu0 %v222_v42 }
  0xd8   :  { %v123_v36 = vpop.f32.mrf.mxu0 }
  0xd9   :  { %v124_v37 = vadd.f32 %v343_v35, %v123_v36 }
  0xda   :  { %v396_v38 = vpop.f32.mrf.mxu0 }
  0xdb   :  { %v127_v39 = vmax.f32 %v124_v37, 0.0 }
  0xdd   :  { %430 = vmatmul.mubr.f32.vlgmr.msra.gmra.mxu1 %v127_v39 }
 0x19d   :  { %v217_v44 = vpop.f32.mrf.mxu1 }
 0x19e   :  { %v218_v45 = vadd.f32 %v345_v43, %v217_v44 }
 0x19f   :  { %v431_v46 = vpop.f32.mrf.mxu1 }
 0x1a0   :  { %v221_v47 = vmax.f32 %v218_v45, 0.0 }
 0x1a2   :  { %465 = vmatmul.mubr.f32.vlgmr.msra.gmra.mxu0 %v221_v47 }
 0x262   :  { %v311_v49 = vpop.f32.mrf.mxu0 }
 0x263   :  { %v312_v50 = vadd.f32 %v346_v48, %v311_v49 }
 0x264   :  { %v466_v51 = vpop.f32.mrf.mxu0 }
 0x265   :  { %v316_v52 = vsel %vm315_vm2, %v312_v50, -inf }
 0x266   :  { %317 = vmax.xlane.f32.xlu0 %v316_v52 }
 0x2ef   :  { %v318_v53 = vpop.xlane.xlu0 %317 }
 0x2f0   :  { %v319_v54 = vsub.f32 %v312_v50, %v318_v53 }
 0x2f2   :  { %v320_v55 = vmul.f32 1.442695, %v319_v54 }
 0x2f4   :  { %473 = vpow2.f32 %v320_v55 }
 0x301   :  { %v474_v56 = vpop.eup %473 }
 0x302   :  { %v322_v57 = vsel %vm315_vm2, %v474_v56, 0.0 }
 0x303   :  { %323 = vadd.xlane.f32.xlu0 %v322_v57 }
 0x38c   :  { %v324_v58 = vpop.xlane.xlu0 %323 }
 0x38d   :  { %475 = vrcp.f32 %v324_v58 }
 0x39a   :  { %v476_v59 = vpop.eup %475 }
 0x39b   :  { %v326_v60 = vmul.f32 %v476_v59, %v474_v56 }
 0x39d   :  { %327 = vst.msk [vmem:[#allocation5] sm:$0xff] %vm315_vm2, %v326_v60 }
 0x39e   :  { %508 = shalt.err (!%p505_p9)
}
 0x39f   :  { %337 = dma.vmem_to_hbm [thread:$0]  %s335_s5, 128, %s733_s7, [#allocation4]  }
 0x3a0   :  { %519 = dma.done.wait [#allocation4], 128  }
 0x3a1   :  { %520 = vsyncadd [#allocation4], 4294967168 }
 0x3a2   :  { %341 = vsyncpa [#allocation3], 1 }
 0x3a3   :  { %342 = vsyncpa [#allocation4], 1 }

</bundles_post_ra>
